<compile_context>
chip_gen: v7x
topology: tpu7x:2x2x1
jax: 0.10.0
libtpu: 0.0.40
codegen_flags: <defaults>
</compile_context>

<pallas_src>
import functools
from typing import Any, List, MutableMapping, Sequence, Tuple

import jax
import jax.numpy as jnp
from jax.experimental import pallas as pl
from jax.experimental.pallas import tpu as pltpu


# --------------------------------------------------------------------------
# Signature / tensor-extraction helpers (1:1 with the PyTorch versions,
# with jnp.ndarray standing in for torch.Tensor).
# --------------------------------------------------------------------------
def compute_input_signature(
    args: Sequence[Any], kwargs: MutableMapping[str, Any]
) -> str:
    signature: List[str] = []
    for arg in args:
        if isinstance(arg, jnp.ndarray):
            signature.append("_".join(str(dim) for dim in arg.shape))
            signature.append(str(arg.dtype))
        else:
            signature.append(str(arg))
    for k, arg in kwargs.items():
        if isinstance(arg, jnp.ndarray):
            signature.append(str(k))
            signature.append("_".join(str(dim) for dim in arg.shape))
            signature.append(str(arg.dtype))
        else:
            signature.append(str(arg))
    return "_".join(signature)


def _round_up(x: int, m: int) -> int:
    return (x + m - 1) // m * m


# --------------------------------------------------------------------------
# Per-TPU-generation tile caps (all multiples of 128 so lane/sublane aligned).
# --------------------------------------------------------------------------
@functools.lru_cache(maxsize=1)
def _tile_caps():
    try:
        kind = jax.devices()[0].device_kind.lower()
    except Exception:  # pragma: no cover - defensive
        kind = ""
    if "v7" in kind:
        # v7x: 2 TCs/chip, 64 MiB VMEM/TC; ~311 f/B to saturate -> 1024x1024x512.
        return {"tm": 1024, "tn": 1024, "tk": 512, "vmem": 48 << 20, "two_tc": True}
    if "v6" in kind:
        # v6e: ~655 f/B to saturate 918 TF/s vs 1.4 TB/s -> 1024x1024x1024.
        return {"tm": 1024, "tn": 1024, "tk": 1024, "vmem": 64 << 20, "two_tc": False}
    if "v5" in kind:
        # v5e: ~240 f/B -> 512x512x1024 (~9 MiB, fits the 16 MiB scoped default).
        return {"tm": 512, "tn": 512, "tk": 1024, "vmem": None, "two_tc": False}
    # Unknown TPU: conservative caps.
    return {"tm": 512, "tn": 512, "tk": 1024, "vmem": None, "two_tc": False}


def _pick_tile(dim: int, cap: int) -> Tuple[int, int]:
    """Return (tile, padded_extent) for one dimension.

    If the dim fits under the cap, use the full extent (always a legal block
    shape, no padding needed).  Otherwise tile at the cap (multiple of 128)
    and pad the extent up to a multiple of the tile.
    """
    if dim <= cap:
        return dim, dim
    return cap, _round_up(dim, cap)


# --------------------------------------------------------------------------
# Pallas kernels: y = x @ W_t + b with W_t = (K, N) pre-transposed bf16.
# x arrives as f32 and is cast to bf16 on-chip (VPU) right before the MXU.
# --------------------------------------------------------------------------
def _linear_kernel_f32_out(x_ref, w_ref, b_ref, o_ref):
    # x_ref: (tm, tk) f32   w_ref: (tk, tn) bf16   b_ref: (1, tn) f32
    # o_ref: (tm, tn) f32 -- resident across the K grid axis, so it doubles
    # as the accumulator (no scratch needed for f32 output).
    k = pl.program_id(2)

    @pl.when(k == 0)
    def _():
        o_ref[...] = jnp.zeros_like(o_ref)

    o_ref[...] += jnp.dot(
        x_ref[...].astype(jnp.bfloat16),
        w_ref[...],
        preferred_element_type=jnp.float32,
    )

    @pl.when(k == pl.num_programs(2) - 1)
    def _():
        # Bias added exactly once, in the final-k epilogue.
        o_ref[...] += b_ref[...]


def _linear_kernel_acc(x_ref, w_ref, b_ref, o_ref, acc_ref):
    # Variant with an explicit f32 scratch accumulator, used when the output
    # dtype is narrower than f32 (e.g. bf16 writeback).
    k = pl.program_id(2)

    @pl.when(k == 0)
    def _():
        acc_ref[...] = jnp.zeros_like(acc_ref)

    acc_ref[...] += jnp.dot(
        x_ref[...].astype(jnp.bfloat16),
        w_ref[...],
        preferred_element_type=jnp.float32,
    )

    @pl.when(k == pl.num_programs(2) - 1)
    def _():
        o_ref[...] = (acc_ref[...] + b_ref[...]).astype(o_ref.dtype)


@functools.partial(jax.jit, static_argnames=("out_features", "out_dtype"))
def pallas_linear(
    x: jnp.ndarray,
    w_t: jnp.ndarray,
    b2d: jnp.ndarray,
    out_features: int,
    out_dtype=jnp.float32,
) -> jnp.ndarray:
    """y = x @ w_t + b.

    x:   (M, K)  f32 activations (cast to bf16 inside the kernel)
    w_t: (Kp, Np) bf16, pre-transposed and tile-padded once at init time
    b2d: (1, Np)  f32, tile-padded once at init time
    """
    M, K = x.shape
    Kp, Np = w_t.shape
    assert Kp >= K, (Kp, K)
    assert b2d.shape == (1, Np), (b2d.shape, Np)

    caps = _tile_caps()
    tm, Mp = _pick_tile(M, caps["tm"])
    tn = min(caps["tn"], Np)
    tk = min(caps["tk"], Kp)
    assert Np % tn == 0 and Kp % tk == 0, (Np, tn, Kp, tk)

    # v7x has two TensorCores: make sure the parallel (i, j) grid has >= 2
    # blocks whenever the problem allows it, so both cores get work.
    if caps["two_tc"] and (Mp // tm) * (Np // tn) == 1:
        if Np % 256 == 0:
            tn = Np // 2
        elif Mp % 16 == 0 and Mp >= 16:
            tm = Mp // 2

    # Pad activations only when the padded extents differ (rare; zero-padded
    # K rows/cols contribute nothing to the accumulation).
    if (Mp, Kp) != (M, K):
        x = jnp.pad(x, ((0, Mp - M), (0, Kp - K)))

    grid = (Mp // tm, Np // tn, Kp // tk)

    out_dt = jnp.dtype(out_dtype)
    if out_dt == jnp.dtype(jnp.float32):
        kernel = _linear_kernel_f32_out
        scratch_shapes: List[Any] = []
    else:
        kernel = _linear_kernel_acc
        scratch_shapes = [pltpu.VMEM((tm, tn), jnp.float32)]

    cost = pl.CostEstimate(
        flops=2 * Mp * Np * Kp,
        transcendentals=0,
        bytes_accessed=(
            Mp * Kp * 4 + Kp * Np * 2 + Np * 4 + Mp * Np * out_dt.itemsize
        ),
    )

    cp_kwargs: MutableMapping[str, Any] = dict(
        dimension_semantics=("parallel", "parallel", "arbitrary"),
    )
    if caps["vmem"] is not None:
        cp_kwargs["vmem_limit_bytes"] = caps["vmem"]

    out_padded = pl.pallas_call(
        kernel,
        out_shape=jax.ShapeDtypeStruct((Mp, Np), out_dt),
        grid_spec=pltpu.PrefetchScalarGridSpec(
            num_scalar_prefetch=0,
            grid=grid,
            in_specs=[
                pl.BlockSpec((tm, tk), lambda i, j, k: (i, k)),
                pl.BlockSpec((tk, tn), lambda i, j, k: (k, j)),
                pl.BlockSpec((1, tn), lambda i, j, k: (0, j)),
            ],
            out_specs=pl.BlockSpec((tm, tn), lambda i, j, k: (i, j)),
            scratch_shapes=scratch_shapes,
        ),
        compiler_params=pltpu.CompilerParams(**cp_kwargs),
        cost_estimate=cost,
    )(x, w_t, b2d)

    if (Mp, Np) != (M, out_features):
        out_padded = out_padded[:M, :out_features]
    return out_padded


def prepare_linear_params(
    weight: jnp.ndarray, bias: jnp.ndarray
) -> Tuple[jnp.ndarray, jnp.ndarray]:
    """One-time static weight prep: transpose, bf16 cast, tile-pad.

    weight: (out_features, in_features) f32 (PyTorch nn.Linear layout)
    bias:   (out_features,) f32
    Returns (w_t, b2d) with w_t: (Kp, Np) bf16, b2d: (1, Np) f32.
    """
    N, K = weight.shape
    caps = _tile_caps()
    tk, Kp = _pick_tile(K, caps["tk"])
    tn, Np = _pick_tile(N, caps["tn"])
    del tk, tn  # padded extents are what matter here
    w_t = jnp.asarray(weight.T, dtype=jnp.bfloat16)  # (K, N)
    if (Kp, Np) != (K, N):
        w_t = jnp.pad(w_t, ((0, Kp - K), (0, Np - N)))
    b2d = jnp.asarray(bias, dtype=jnp.float32).reshape(1, N)
    if Np != N:
        b2d = jnp.pad(b2d, ((0, 0), (0, Np - N)))
    return w_t, b2d


# --------------------------------------------------------------------------
# JAX analog of the NPU `Module` dispatcher.
# --------------------------------------------------------------------------
class Module:
    """JAX analog of the NPU Module: signature-keyed compiled-model cache."""

    def __init__(self, profile: bool = False) -> None:
        self._nn_factory_cache: MutableMapping[str, Any] = {}
        self._npu_inference = False
        self.npu_top_level_module = True
        self.profile = profile

    # -- argument plumbing (same semantics as the torch version) --
    def extract_tensors_from_arguments(
        self, args: Sequence[Any]
    ) -> Tuple[List[jnp.ndarray], List[Any]]:
        tensors: List[jnp.ndarray] = []
        non_tensors: List[Any] = []
        for arg in args:
            if isinstance(arg, jnp.ndarray):
                tensors.append(arg)
            elif isinstance(arg, (list, tuple)):
                t, nt = self.extract_tensors_from_arguments(arg)
                tensors.extend(t)
                non_tensors.extend(nt)
            elif isinstance(arg, dict):
                t, nt = self.extract_tensors_from_arguments(list(arg.values()))
                tensors.extend(t)
                non_tensors.extend(nt)
        return tensors, non_tensors

    def create_model(self, args, kwargs):
        # NNFactory graph capture + compile -> here: jax.jit over the
        # Pallas-backed forward of the concrete subclass.
        # TODO(synk): NNFactory.parameter/patch_modules/torch profiling have
        # no Pallas equivalent; jax.jit tracing plays the graph-capture role.
        return jax.jit(lambda *tensor_args: self.forward(*tensor_args))

    def factory_forward(self, *args: Any, **kwargs: Any):
        signature = compute_input_signature(args, kwargs)
        model = self._nn_factory_cache[signature]
        tensor_args, _ = self.extract_tensors_from_arguments(args)
        tensor_args.extend(
            self.extract_tensors_from_arguments(list(kwargs.values()))[0]
        )
        return model(*tensor_args)

    def to(self, device: str):
        if isinstance(device, str) and device.lower() == "npu":
            self._npu_inference = True
        return self

    def __call__(self, *args: Any, **kwargs: Any) -> Any:
        if self._npu_inference and self.npu_top_level_module:
            signature = compute_input_signature(args, kwargs)
            if signature not in self._nn_factory_cache:
                self._nn_factory_cache[signature] = self.create_model(args, kwargs)
            return self.factory_forward(*args, **kwargs)
        return self.forward(*args, **kwargs)

    def forward(self, *args, **kwargs):
        # Base-class forward is abstract (raises NotImplementedError in
        # PyTorch); concrete compute lives in subclasses.
        raise NotImplementedError


# Minimal concrete subclass so the dispatch path has a real Pallas hot path.
class DemoLinear(Module):
    def __init__(self, in_features: int, out_features: int) -> None:
        super().__init__()
        key = jax.random.PRNGKey(0)
        kw, kb = jax.random.split(key)
        # PyTorch nn.Linear weight layout is (out, in).  All static prep
        # (transpose, bf16 cast, tile-padding) happens exactly once here,
        # never in the per-call path.
        w = jax.random.normal(kw, (out_features, in_features), jnp.float32) * 0.05
        b = jax.random.normal(kb, (out_features,), jnp.float32) * 0.01
        self.weight_t, self.bias2d = prepare_linear_params(w, b)  # (Kp,Np), (1,Np)
        self.out_features = out_features
        # Kept only for the reference check in __main__.
        self._ref_weight = w
        self._ref_bias = b

    def forward(self, x: jnp.ndarray) -> jnp.ndarray:
        return pallas_linear(
            x, self.weight_t, self.bias2d, self.out_features, out_dtype=jnp.float32
        )


if __name__ == "__main__":
    batch, hidden, out_features = 8, 32, 16
    key = jax.random.PRNGKey(0)
    x = jax.random.normal(key, (batch, hidden), jnp.float32)

    mod = DemoLinear(hidden, out_features).to("npu")  # signature-cached dispatch
    y = mod(x)                                        # first call: compile + cache
    y = mod(x)                                        # second call: cache hit path
    jax.block_until_ready(y)

    # Correctness check against plain JAX reference with the same bf16 rounding.
    x_bf = x.astype(jnp.bfloat16).astype(jnp.float32)
    w_bf = mod._ref_weight.T.astype(jnp.bfloat16).astype(jnp.float32)  # (K, N)
    ref = x_bf @ w_bf + mod._ref_bias
    assert y.shape == (batch, out_features), y.shape
    assert jnp.allclose(y, ref, atol=1e-2, rtol=1e-2), float(
        jnp.max(jnp.abs(y - ref))
    )

    print("KERNEL_OK")
</pallas_src>

<mosaic_0001>
module attributes {stable_mosaic.version = 11 : i64} {
  func.func @_linear_kernel_f32_out(%arg0: i32, %arg1: i32, %arg2: i32, %arg3: memref<8x32xf32, #tpu.memory_space<vmem>>, %arg4: memref<32x16xbf16, #tpu.memory_space<vmem>>, %arg5: memref<1x16xf32, #tpu.memory_space<vmem>>, %arg6: memref<8x16xf32, #tpu.memory_space<vmem>>) attributes {dimension_semantics = [#tpu.dimension_semantics<parallel>, #tpu.dimension_semantics<parallel>, #tpu.dimension_semantics<arbitrary>], iteration_bounds = array<i64: 1, 1, 1>, scalar_prefetch = 0 : i64, scratch_operands = 0 : i64, tpu.core_type = #tpu.core_type<tc>, window_params = [{transform_indices = @transform_0, window_bounds = array<i64: 8, 32>}, {transform_indices = @transform_1, window_bounds = array<i64: 32, 16>}, {transform_indices = @transform_2, window_bounds = array<i64: 1, 16>}, {transform_indices = @transform_3, window_bounds = array<i64: 8, 16>}]} {
    %c0_i32 = arith.constant 0 : i32
    %0 = arith.cmpi eq, %arg2, %c0_i32 : i32
    %1 = arith.extui %0 : i1 to i32
    %c0_i32_0 = arith.constant 0 : i32
    %2 = arith.cmpi ne, %1, %c0_i32_0 : i32
    scf.if %2 {
      %cst_10 = arith.constant 0.000000e+00 : f32
      %13 = vector.broadcast %cst_10 : f32 to vector<8x16xf32>
      %c0_11 = arith.constant 0 : index
      %c0_12 = arith.constant 0 : index
      %14 = vector.load %arg6[%c0_11, %c0_12] : memref<8x16xf32, #tpu.memory_space<vmem>>, vector<8x16xf32>
      tpu.vector_store %arg6[%c0_11, %c0_12], %13 {strides = array<i32>} : memref<8x16xf32, #tpu.memory_space<vmem>>, vector<8x16xf32>,
    } else {
    }
    %c0 = arith.constant 0 : index
    %c0_1 = arith.constant 0 : index
    %3 = vector.load %arg6[%c0, %c0_1] : memref<8x16xf32, #tpu.memory_space<vmem>>, vector<8x16xf32>
    %c0_2 = arith.constant 0 : index
    %c0_3 = arith.constant 0 : index
    %4 = vector.load %arg3[%c0_2, %c0_3] : memref<8x32xf32, #tpu.memory_space<vmem>>, vector<8x32xf32>
    %5 = arith.truncf %4 : vector<8x32xf32> to vector<8x32xbf16>
    %c0_4 = arith.constant 0 : index
    %c0_5 = arith.constant 0 : index
    %6 = vector.load %arg4[%c0_4, %c0_5] : memref<32x16xbf16, #tpu.memory_space<vmem>>, vector<32x16xbf16>
    %cst = arith.constant dense<0.000000e+00> : vector<8x16xf32>
    %7 = tpu.matmul %5, %6, %cst {dimension_numbers = #tpu.dot_dimension_numbers<[1], [0], [0], [1], [0, 0, 1, 1], [], []>} : vector<8x32xbf16>, vector<32x16xbf16>, vector<8x16xf32> -> vector<8x16xf32>
    %8 = arith.addf %3, %7 : vector<8x16xf32>
    %c0_6 = arith.constant 0 : index
    %c0_7 = arith.constant 0 : index
    %9 = vector.load %arg6[%c0_6, %c0_7] : memref<8x16xf32, #tpu.memory_space<vmem>>, vector<8x16xf32>
    tpu.vector_store %arg6[%c0_6, %c0_7], %8 {strides = array<i32>} : memref<8x16xf32, #tpu.memory_space<vmem>>, vector<8x16xf32>,
    %c0_i32_8 = arith.constant 0 : i32
    %10 = arith.cmpi eq, %arg2, %c0_i32_8 : i32
    %11 = arith.extui %10 : i1 to i32
    %c0_i32_9 = arith.constant 0 : i32
    %12 = arith.cmpi ne, %11, %c0_i32_9 : i32
    scf.if %12 {
      %c0_10 = arith.constant 0 : index
      %c0_11 = arith.constant 0 : index
      %13 = vector.load %arg6[%c0_10, %c0_11] : memref<8x16xf32, #tpu.memory_space<vmem>>, vector<8x16xf32>
      %c0_12 = arith.constant 0 : index
      %c0_13 = arith.constant 0 : index
      %14 = vector.load %arg5[%c0_12, %c0_13] : memref<1x16xf32, #tpu.memory_space<vmem>>, vector<1x16xf32>
      %15 = vector.broadcast %14 : vector<1x16xf32> to vector<8x16xf32>
      %16 = arith.addf %13, %15 : vector<8x16xf32>
      %c0_14 = arith.constant 0 : index
      %c0_15 = arith.constant 0 : index
      %17 = vector.load %arg6[%c0_14, %c0_15] : memref<8x16xf32, #tpu.memory_space<vmem>>, vector<8x16xf32>
      tpu.vector_store %arg6[%c0_14, %c0_15], %16 {strides = array<i32>} : memref<8x16xf32, #tpu.memory_space<vmem>>, vector<8x16xf32>,
    } else {
    }
    return
  }
  func.func @transform_0(%arg0: i32, %arg1: i32, %arg2: i32) -> (i32, i32) {
    %c0_i32 = arith.constant 0 : i32
    return %arg0, %arg2 : i32, i32
  }
  func.func @transform_1(%arg0: i32, %arg1: i32, %arg2: i32) -> (i32, i32) {
    %c0_i32 = arith.constant 0 : i32
    return %arg2, %arg1 : i32, i32
  }
  func.func @transform_2(%arg0: i32, %arg1: i32, %arg2: i32) -> (i32, i32) {
    %c0_i32 = arith.constant 0 : i32
    %c0_i32_0 = arith.constant 0 : i32
    return %c0_i32, %arg1 : i32, i32
  }
  func.func @transform_3(%arg0: i32, %arg1: i32, %arg2: i32) -> (i32, i32) {
    %c0_i32 = arith.constant 0 : i32
    return %arg0, %arg1 : i32, i32
  }
}

</mosaic_0001>

<bundles_post_ra>
// kernel: pallas_linear.1
= control target key start
LH: loop header
LB: loop body
LE: loop exit
PB: predicated region body
PF: predicated region fallthrough
CT: control target
= control target key end

     0   :  { %v159_v1 = vmov 0.0   ;;  %vm160_vm0 = vmmov 0   ;;  %vm20_vm1 = vcmask 130048   ;;  %s209_s0 = inlined_call_operand.vmem [shape: f32[8,32], index: 0, kind: input, shape index: {}]   ;;  %s210_s1 = inlined_call_operand.vmem [shape: bf16[32,16], index: 1, kind: input, shape index: {}]   ;;  %s211_s2 = inlined_call_operand.vmem [shape: f32[1,16], index: 2, kind: input, shape index: {}]   ;;  %s212_s3 = inlined_call_operand.hbm [shape: f32[8,16], index: 3, kind: output, shape index: {}]  }
   0x1   :  { %v133_v0 = vld [vmem:[%s210_s1] sm:$0xff]   ;;  %122 = vmatprep.subr.bf16.mxu0 %v159_v1  ;;  %v134_v2 = vld [vmem:[%s210_s1 + $0x8] sm:$0xff]   ;;  %126 = vmatprep.mubr.msk.bf16.mxu0 %vm160_vm0, %v159_v1 }
   0x2   :  { %123 = vmatpush3.bf16.msra.mxu0 %v133_v0  ;;  %v23_v3 = vld [vmem:[%s209_s0] sm:$0xff] }
   0x3   :  { %8 = vsyncpa [#allocation3], 0  ;;  %124 = vmatprep.subr.bf16.mxu0 %v159_v1  ;;  %21 = vst.msk [vmem:[#allocation2] sm:$0xff] %vm20_vm1, %v159_v1  ;;  %v24_v4 = vpack.c.bf16 %v23_v3, %v23_v3  ;;  %vm41_vm2 = vcmask 261120   ;;  %v118_v11 = vld [vmem:[%s211_s2] ss:$0 sm:$0xff] }
   0x4   :  { %s161_s0 = smov [#allocation2]  }
   0x5   :  { %s107_s19 = sshll.u32 %s161_s0, 4  ;;  %s108_s19 = int_to_ptr.vmem [resolvable:$true] %s107_s19 }
   0x6   :  { %125 = vmatpush3.bf16.msra.mxu0 %v134_v2  ;;  %s135_s20 = scalar_lea.vmem %s108_s19, 128  ;;  %p140_p1 = scmp.lt.s32.totalorder %s108_s19, %s108_s19 }
   0x7   :  { %p136_p0 = scmp.ne.s32.totalorder %s108_s19, %s135_s20  ;;  %p141_p2 = scmp.lt.s32.totalorder %s135_s20, %s135_s20 }
   0x9   :  { %127 = vmatmul.mubr.msk.bf16.vlgmr.msra.gmra.mrb[0].mxu0 %vm41_vm2, %v24_v4  ;;  %p142_p3 = por %p141_p2, %p140_p1 }
   0xa   :  { %v22_v5 = vld [vmem:[#allocation2] sm:$0xff] }
   0xb   :  { %p143_p4 = pnand %p142_p3, %p136_p0 }
  0xdc   :  { %v79_v6 = vpop.f32.mrb[0].mxu0 }
  0xdd   :  { %v85_v7 = vadd.f32 %v79_v6, %v22_v5  ;;  %v128_v8 = vpop.f32.mrb[1].mxu0 }
  0xde   :  { %v82_v9 = vpop.f32.mrb[2].mxu0 }
  0xdf   :  { %87 = vst.msk [vmem:[#allocation2] sm:$0xff] %vm20_vm1, %v85_v7  ;;  %v129_v10 = vpop.f32.mrb[3].mxu0 }
  0xe6   :  { %v91_v12 = vld [vmem:[#allocation2] sm:$0xff] }
  0xe7   :  { %v99_v13 = vadd.f32 %v118_v11, %v91_v12 }
  0xe9   :  { %100 = vst.msk [vmem:[#allocation2] sm:$0xff] %vm20_vm1, %v99_v13 }
  0xea   :  { %146 = shalt.err (!%p143_p4)
}
  0xeb   :  { %s147_s23 = scalar_lea.hbm %s212_s3, 128 }
  0xec   :  { %p148_p5 = scmp.ne.s32.totalorder %s212_s3, %s147_s23  ;;  %p151_p6 = scmp.lt.u32.totalorder %s147_s23, %s212_s3 }
  0xee   :  { %p153_p7 = pnand %p151_p6, %p148_p5 }
  0xf0   :  { %156 = shalt.err (!%p153_p7)
}
  0xf1   :  { %110 = dma.vmem_to_hbm [thread:$0]  %s108_s19, 128, %s212_s3, [#allocation3]  }
  0xf2   :  { %157 = dma.done.wait [#allocation3], 128  }
  0xf3   :  { %158 = vsyncadd [#allocation3], 4294967168 }
  0xf4   :  { %114 = vsyncpa [#allocation3], 1 }

</bundles_post_ra>
